<compile_context>
chip_gen: v7x
topology: tpu7x:2x2x1
jax: 0.10.0
libtpu: 0.0.40
codegen_flags: <defaults>
</compile_context>

<pallas_src>
import functools

import jax
import jax.numpy as jnp
import numpy as np
from jax.experimental import pallas as pl
from jax.experimental.pallas import tpu as pltpu


def _round_up(x, m):
    return ((x + m - 1) // m) * m


def _silu_f32(z):
    # z is f32: sigmoid goes to the EUP slot, the multiply to the VPU.
    return z * jax.nn.sigmoid(z)


def qnetwork_kernel(x_ref,
                    w1_ref, b1_ref,
                    w2_ref, b2_ref,
                    w3_ref, b3_ref,
                    w4_ref, b4_ref,
                    w5_ref, b5_ref,
                    o_ref):
    """One batch tile of the 5-layer MLP: 5 MXU matmuls + f32 SiLU epilogues."""
    operand_dtype = x_ref.dtype  # f32, or bf16 if the caller down-cast operands
    h = x_ref[...]
    for w_ref, b_ref in ((w1_ref, b1_ref), (w2_ref, b2_ref),
                         (w3_ref, b3_ref), (w4_ref, b4_ref)):
        # MXU matmul with f32 accumulation; bias add + SiLU kept in f32.
        z = jnp.dot(h, w_ref[...], preferred_element_type=jnp.float32)
        z = _silu_f32(z + b_ref[...])
        h = z.astype(operand_dtype)          # back to MXU operand dtype
    out = jnp.dot(h, w5_ref[...], preferred_element_type=jnp.float32) + b5_ref[...]
    o_ref[...] = out.astype(o_ref.dtype)     # lane-dense (multiple-of-128) store


@functools.partial(
    jax.jit,
    static_argnames=("n_actions", "n_quantiles", "block_b", "operand_dtype"))
def qnetwork_forward(x, params, *, n_actions, n_quantiles,
                     block_b=256, operand_dtype=jnp.float32):
    """QNetwork MLP via a batch-tiled Pallas kernel.

    Args:
      x: (B, D_in) observations (any float dtype; cast like PyTorch x.float()).
      params: (w1, b1, ..., w5, b5); weights stored (in, out), biases (1, out).
      block_b: batch tile (rows per grid step).
      operand_dtype: MXU operand dtype (f32 default; bf16 for v6e/v7x throughput).
    Returns:
      quantiles: (B, n_actions, n_quantiles) float32.
    """
    w1, b1, w2, b2, w3, b3, w4, b4, w5, b5 = params
    x = x.astype(jnp.float32)                      # matches PyTorch x.float()
    B, d_in = x.shape
    hidden = w1.shape[1]
    out_dim = n_actions * n_quantiles

    H = _round_up(hidden, 128)                     # lane-dense hidden (64 -> 128)
    O = _round_up(out_dim, 128)                    # lane-dense output (100 -> 128)

    def pad2(a, rows, cols):
        a = a.astype(jnp.float32)
        return jnp.pad(a, ((0, rows - a.shape[0]), (0, cols - a.shape[1])))

    # Zero-padding keeps padded lanes exactly zero through SiLU, so results on
    # the original lanes are unchanged.
    w1p, b1p = pad2(w1, d_in, H), pad2(b1, 1, H)
    w2p, b2p = pad2(w2, H, H),   pad2(b2, 1, H)
    w3p, b3p = pad2(w3, H, H),   pad2(b3, 1, H)
    w4p, b4p = pad2(w4, H, H),   pad2(b4, 1, H)
    w5p, b5p = pad2(w5, H, O),   pad2(b5, 1, O)

    # MXU operands may be bf16 (v6e/v7x); biases + accumulation + SiLU stay f32.
    xo = x.astype(operand_dtype)
    w1p, w2p, w3p, w4p, w5p = (w.astype(operand_dtype)
                               for w in (w1p, w2p, w3p, w4p, w5p))

    # Batch tiling: pad B up to a multiple of the tile, grid over batch.
    tb = min(block_b, _round_up(B, 8))
    B_pad = _round_up(B, tb)
    if B_pad != B:
        xo = jnp.pad(xo, ((0, B_pad - B), (0, 0)))
    grid = (B_pad // tb,)

    def resident(a):
        # Whole array in VMEM, same block every grid step -> fetched once.
        return pl.BlockSpec(a.shape, lambda i: (0, 0))

    in_specs = [
        pl.BlockSpec((tb, d_in), lambda i: (i, 0)),
        resident(w1p), resident(b1p),
        resident(w2p), resident(b2p),
        resident(w3p), resident(b3p),
        resident(w4p), resident(b4p),
        resident(w5p), resident(b5p),
    ]

    out = pl.pallas_call(
        qnetwork_kernel,
        out_shape=jax.ShapeDtypeStruct((B_pad, O), jnp.float32),
        grid=grid,
        in_specs=in_specs,
        out_specs=pl.BlockSpec((tb, O), lambda i: (i, 0)),
        compiler_params=pltpu.CompilerParams(
            dimension_semantics=("parallel",)),   # 2 TCs on v7x split the batch
    )(xo, w1p, b1p, w2p, b2p, w3p, b3p, w4p, b4p, w5p, b5p)

    # Drop batch/output padding, then nn.Unflatten(1, (n, n_quantiles)).
    return out[:B, :out_dim].reshape(B, n_actions, n_quantiles)


def init_qnetwork_params(key, input_size, hidden, n_actions, n_quantiles):
    """Matches init_weights: weight ~ N(0, (1/sqrt(3)/2)^2), bias = 0."""
    std = 1.0 / np.sqrt(3.0) / 2.0  # init_weights hardcodes input_size = 3
    dims = [(input_size, hidden), (hidden, hidden), (hidden, hidden),
            (hidden, hidden), (hidden, n_actions * n_quantiles)]
    params = []
    for d in dims:
        key, sub = jax.random.split(key)
        w = std * jax.random.normal(sub, d, dtype=jnp.float32)
        b = jnp.zeros((1, d[1]), dtype=jnp.float32)
        params.extend([w, b])
    return tuple(params)


def reference_forward(x, params, n_actions, n_quantiles):
    """Plain-JAX reference matching the PyTorch nn.Sequential."""
    h = x.astype(jnp.float32)
    w1, b1, w2, b2, w3, b3, w4, b4, w5, b5 = params
    h = jax.nn.silu(h @ w1 + b1)
    h = jax.nn.silu(h @ w2 + b2)
    h = jax.nn.silu(h @ w3 + b3)
    h = jax.nn.silu(h @ w4 + b4)
    out = h @ w5 + b5
    return out.reshape(x.shape[0], n_actions, n_quantiles)


if __name__ == "__main__":
    # Shapes implied by the module: obs_dim=4 (extended_value=True), hidden=64,
    # n_actions=2, n_quantiles=50.
    B, D_IN, HIDDEN, N_ACTIONS, N_QUANTILES = 8, 4, 64, 2, 50

    key = jax.random.PRNGKey(0)
    key, xk = jax.random.split(key)
    x = jax.random.normal(xk, (B, D_IN), dtype=jnp.float32)
    params = init_qnetwork_params(key, D_IN, HIDDEN, N_ACTIONS, N_QUANTILES)

    # f32 path, single-tile grid.
    quantiles = qnetwork_forward(x, params, n_actions=N_ACTIONS,
                                 n_quantiles=N_QUANTILES)
    quantiles = jax.block_until_ready(quantiles)
    ref = reference_forward(x, params, N_ACTIONS, N_QUANTILES)
    np.testing.assert_allclose(np.asarray(quantiles), np.asarray(ref),
                               rtol=1e-5, atol=1e-5)
    assert quantiles.shape == (B, N_ACTIONS, N_QUANTILES)

    # Larger batch exercising grid > 1 + batch padding (200 rows, 128-row tiles).
    B2 = 200
    key, xk2 = jax.random.split(key)
    x2 = jax.random.normal(xk2, (B2, D_IN), dtype=jnp.float32)
    q2 = qnetwork_forward(x2, params, n_actions=N_ACTIONS,
                          n_quantiles=N_QUANTILES, block_b=128)
    q2 = jax.block_until_ready(q2)
    ref2 = reference_forward(x2, params, N_ACTIONS, N_QUANTILES)
    np.testing.assert_allclose(np.asarray(q2), np.asarray(ref2),
                               rtol=1e-5, atol=1e-5)
    assert q2.shape == (B2, N_ACTIONS, N_QUANTILES)

    # bf16 MXU-operand smoke test (f32 accumulation + f32 SiLU inside kernel).
    q3 = qnetwork_forward(x2, params, n_actions=N_ACTIONS,
                          n_quantiles=N_QUANTILES, block_b=128,
                          operand_dtype=jnp.bfloat16)
    q3 = jax.block_until_ready(q3)
    assert q3.shape == (B2, N_ACTIONS, N_QUANTILES)
    assert bool(jnp.all(jnp.isfinite(q3)))

    print("KERNEL_OK")
</pallas_src>

<mosaic_0001>
module attributes {stable_mosaic.version = 11 : i64} {
  func.func @qnetwork_kernel(%arg0: i32, %arg1: memref<8x4xf32, #tpu.memory_space<vmem>>, %arg2: memref<4x128xf32, #tpu.memory_space<vmem>>, %arg3: memref<1x128xf32, #tpu.memory_space<vmem>>, %arg4: memref<128x128xf32, #tpu.memory_space<vmem>>, %arg5: memref<1x128xf32, #tpu.memory_space<vmem>>, %arg6: memref<128x128xf32, #tpu.memory_space<vmem>>, %arg7: memref<1x128xf32, #tpu.memory_space<vmem>>, %arg8: memref<128x128xf32, #tpu.memory_space<vmem>>, %arg9: memref<1x128xf32, #tpu.memory_space<vmem>>, %arg10: memref<128x128xf32, #tpu.memory_space<vmem>>, %arg11: memref<1x128xf32, #tpu.memory_space<vmem>>, %arg12: memref<8x128xf32, #tpu.memory_space<vmem>>) attributes {dimension_semantics = [#tpu.dimension_semantics<parallel>], iteration_bounds = array<i64: 1>, scalar_prefetch = 0 : i64, scratch_operands = 0 : i64, tpu.core_type = #tpu.core_type<tc>, window_params = [{transform_indices = @transform_0, window_bounds = array<i64: 8, 4>}, {pipeline_mode = #tpu.pipeline_mode<synchronous>, transform_indices = @transform_1, window_bounds = array<i64: 4, 128>}, {pipeline_mode = #tpu.pipeline_mode<synchronous>, transform_indices = @transform_2, window_bounds = array<i64: 1, 128>}, {pipeline_mode = #tpu.pipeline_mode<synchronous>, transform_indices = @transform_3, window_bounds = array<i64: 128, 128>}, {pipeline_mode = #tpu.pipeline_mode<synchronous>, transform_indices = @transform_4, window_bounds = array<i64: 1, 128>}, {pipeline_mode = #tpu.pipeline_mode<synchronous>, transform_indices = @transform_5, window_bounds = array<i64: 128, 128>}, {pipeline_mode = #tpu.pipeline_mode<synchronous>, transform_indices = @transform_6, window_bounds = array<i64: 1, 128>}, {pipeline_mode = #tpu.pipeline_mode<synchronous>, transform_indices = @transform_7, window_bounds = array<i64: 128, 128>}, {pipeline_mode = #tpu.pipeline_mode<synchronous>, transform_indices = @transform_8, window_bounds = array<i64: 1, 128>}, {pipeline_mode = #tpu.pipeline_mode<synchronous>, transform_indices = @transform_9, window_bounds = array<i64: 128, 128>}, {pipeline_mode = #tpu.pipeline_mode<synchronous>, transform_indices = @transform_10, window_bounds = array<i64: 1, 128>}, {transform_indices = @transform_11, window_bounds = array<i64: 8, 128>}]} {
    %c0 = arith.constant 0 : index
    %c0_0 = arith.constant 0 : index
    %0 = vector.load %arg1[%c0, %c0_0] : memref<8x4xf32, #tpu.memory_space<vmem>>, vector<8x4xf32>
    %c0_1 = arith.constant 0 : index
    %c0_2 = arith.constant 0 : index
    %1 = vector.load %arg2[%c0_1, %c0_2] : memref<4x128xf32, #tpu.memory_space<vmem>>, vector<4x128xf32>
    %cst = arith.constant dense<0.000000e+00> : vector<8x128xf32>
    %2 = tpu.matmul %0, %1, %cst {dimension_numbers = #tpu.dot_dimension_numbers<[1], [0], [0], [1], [0, 0, 1, 1], [], []>} : vector<8x4xf32>, vector<4x128xf32>, vector<8x128xf32> -> vector<8x128xf32>
    %c0_3 = arith.constant 0 : index
    %c0_4 = arith.constant 0 : index
    %3 = vector.load %arg3[%c0_3, %c0_4] : memref<1x128xf32, #tpu.memory_space<vmem>>, vector<1x128xf32>
    %4 = vector.broadcast %3 : vector<1x128xf32> to vector<8x128xf32>
    %5 = arith.addf %2, %4 : vector<8x128xf32>
    %6 = arith.negf %5 : vector<8x128xf32>
    %7 = math.exp %6 : vector<8x128xf32>
    %cst_5 = arith.constant 1.000000e+00 : f32
    %8 = vector.broadcast %cst_5 : f32 to vector<8x128xf32>
    %9 = arith.addf %8, %7 : vector<8x128xf32>
    %10 = arith.divf %8, %9 : vector<8x128xf32>
    %11 = arith.mulf %5, %10 : vector<8x128xf32>
    %c0_6 = arith.constant 0 : index
    %c0_7 = arith.constant 0 : index
    %12 = vector.load %arg4[%c0_6, %c0_7] : memref<128x128xf32, #tpu.memory_space<vmem>>, vector<128x128xf32>
    %cst_8 = arith.constant dense<0.000000e+00> : vector<8x128xf32>
    %13 = tpu.matmul %11, %12, %cst_8 {dimension_numbers = #tpu.dot_dimension_numbers<[1], [0], [0], [1], [0, 0, 1, 1], [], []>} : vector<8x128xf32>, vector<128x128xf32>, vector<8x128xf32> -> vector<8x128xf32>
    %c0_9 = arith.constant 0 : index
    %c0_10 = arith.constant 0 : index
    %14 = vector.load %arg5[%c0_9, %c0_10] : memref<1x128xf32, #tpu.memory_space<vmem>>, vector<1x128xf32>
    %15 = vector.broadcast %14 : vector<1x128xf32> to vector<8x128xf32>
    %16 = arith.addf %13, %15 : vector<8x128xf32>
    %17 = arith.negf %16 : vector<8x128xf32>
    %18 = math.exp %17 : vector<8x128xf32>
    %cst_11 = arith.constant 1.000000e+00 : f32
    %19 = vector.broadcast %cst_11 : f32 to vector<8x128xf32>
    %20 = arith.addf %19, %18 : vector<8x128xf32>
    %21 = arith.divf %19, %20 : vector<8x128xf32>
    %22 = arith.mulf %16, %21 : vector<8x128xf32>
    %c0_12 = arith.constant 0 : index
    %c0_13 = arith.constant 0 : index
    %23 = vector.load %arg6[%c0_12, %c0_13] : memref<128x128xf32, #tpu.memory_space<vmem>>, vector<128x128xf32>
    %cst_14 = arith.constant dense<0.000000e+00> : vector<8x128xf32>
    %24 = tpu.matmul %22, %23, %cst_14 {dimension_numbers = #tpu.dot_dimension_numbers<[1], [0], [0], [1], [0, 0, 1, 1], [], []>} : vector<8x128xf32>, vector<128x128xf32>, vector<8x128xf32> -> vector<8x128xf32>
    %c0_15 = arith.constant 0 : index
    %c0_16 = arith.constant 0 : index
    %25 = vector.load %arg7[%c0_15, %c0_16] : memref<1x128xf32, #tpu.memory_space<vmem>>, vector<1x128xf32>
    %26 = vector.broadcast %25 : vector<1x128xf32> to vector<8x128xf32>
    %27 = arith.addf %24, %26 : vector<8x128xf32>
    %28 = arith.negf %27 : vector<8x128xf32>
    %29 = math.exp %28 : vector<8x128xf32>
    %cst_17 = arith.constant 1.000000e+00 : f32
    %30 = vector.broadcast %cst_17 : f32 to vector<8x128xf32>
    %31 = arith.addf %30, %29 : vector<8x128xf32>
    %32 = arith.divf %30, %31 : vector<8x128xf32>
    %33 = arith.mulf %27, %32 : vector<8x128xf32>
    %c0_18 = arith.constant 0 : index
    %c0_19 = arith.constant 0 : index
    %34 = vector.load %arg8[%c0_18, %c0_19] : memref<128x128xf32, #tpu.memory_space<vmem>>, vector<128x128xf32>
    %cst_20 = arith.constant dense<0.000000e+00> : vector<8x128xf32>
    %35 = tpu.matmul %33, %34, %cst_20 {dimension_numbers = #tpu.dot_dimension_numbers<[1], [0], [0], [1], [0, 0, 1, 1], [], []>} : vector<8x128xf32>, vector<128x128xf32>, vector<8x128xf32> -> vector<8x128xf32>
    %c0_21 = arith.constant 0 : index
    %c0_22 = arith.constant 0 : index
    %36 = vector.load %arg9[%c0_21, %c0_22] : memref<1x128xf32, #tpu.memory_space<vmem>>, vector<1x128xf32>
    %37 = vector.broadcast %36 : vector<1x128xf32> to vector<8x128xf32>
    %38 = arith.addf %35, %37 : vector<8x128xf32>
    %39 = arith.negf %38 : vector<8x128xf32>
    %40 = math.exp %39 : vector<8x128xf32>
    %cst_23 = arith.constant 1.000000e+00 : f32
    %41 = vector.broadcast %cst_23 : f32 to vector<8x128xf32>
    %42 = arith.addf %41, %40 : vector<8x128xf32>
    %43 = arith.divf %41, %42 : vector<8x128xf32>
    %44 = arith.mulf %38, %43 : vector<8x128xf32>
    %c0_24 = arith.constant 0 : index
    %c0_25 = arith.constant 0 : index
    %45 = vector.load %arg10[%c0_24, %c0_25] : memref<128x128xf32, #tpu.memory_space<vmem>>, vector<128x128xf32>
    %cst_26 = arith.constant dense<0.000000e+00> : vector<8x128xf32>
    %46 = tpu.matmul %44, %45, %cst_26 {dimension_numbers = #tpu.dot_dimension_numbers<[1], [0], [0], [1], [0, 0, 1, 1], [], []>} : vector<8x128xf32>, vector<128x128xf32>, vector<8x128xf32> -> vector<8x128xf32>
    %c0_27 = arith.constant 0 : index
    %c0_28 = arith.constant 0 : index
    %47 = vector.load %arg11[%c0_27, %c0_28] : memref<1x128xf32, #tpu.memory_space<vmem>>, vector<1x128xf32>
    %48 = vector.broadcast %47 : vector<1x128xf32> to vector<8x128xf32>
    %49 = arith.addf %46, %48 : vector<8x128xf32>
    %c0_29 = arith.constant 0 : index
    %c0_30 = arith.constant 0 : index
    %50 = vector.load %arg12[%c0_29, %c0_30] : memref<8x128xf32, #tpu.memory_space<vmem>>, vector<8x128xf32>
    tpu.vector_store %arg12[%c0_29, %c0_30], %49 {strides = array<i32>} : memref<8x128xf32, #tpu.memory_space<vmem>>, vector<8x128xf32>,
    return
  }
  func.func @transform_0(%arg0: i32) -> (i32, i32) {
    %c0_i32 = arith.constant 0 : i32
    %c0_i32_0 = arith.constant 0 : i32
    return %arg0, %c0_i32 : i32, i32
  }
  func.func @transform_1(%arg0: i32) -> (i32, i32) {
    %c0_i32 = arith.constant 0 : i32
    %c0_i32_0 = arith.constant 0 : i32
    %c0_i32_1 = arith.constant 0 : i32
    return %c0_i32, %c0_i32_0 : i32, i32
  }
  func.func @transform_2(%arg0: i32) -> (i32, i32) {
    %c0_i32 = arith.constant 0 : i32
    %c0_i32_0 = arith.constant 0 : i32
    %c0_i32_1 = arith.constant 0 : i32
    return %c0_i32, %c0_i32_0 : i32, i32
  }
  func.func @transform_3(%arg0: i32) -> (i32, i32) {
    %c0_i32 = arith.constant 0 : i32
    %c0_i32_0 = arith.constant 0 : i32
    %c0_i32_1 = arith.constant 0 : i32
    return %c0_i32, %c0_i32_0 : i32, i32
  }
  func.func @transform_4(%arg0: i32) -> (i32, i32) {
    %c0_i32 = arith.constant 0 : i32
    %c0_i32_0 = arith.constant 0 : i32
    %c0_i32_1 = arith.constant 0 : i32
    return %c0_i32, %c0_i32_0 : i32, i32
  }
  func.func @transform_5(%arg0: i32) -> (i32, i32) {
    %c0_i32 = arith.constant 0 : i32
    %c0_i32_0 = arith.constant 0 : i32
    %c0_i32_1 = arith.constant 0 : i32
    return %c0_i32, %c0_i32_0 : i32, i32
  }
  func.func @transform_6(%arg0: i32) -> (i32, i32) {
    %c0_i32 = arith.constant 0 : i32
    %c0_i32_0 = arith.constant 0 : i32
    %c0_i32_1 = arith.constant 0 : i32
    return %c0_i32, %c0_i32_0 : i32, i32
  }
  func.func @transform_7(%arg0: i32) -> (i32, i32) {
    %c0_i32 = arith.constant 0 : i32
    %c0_i32_0 = arith.constant 0 : i32
    %c0_i32_1 = arith.constant 0 : i32
    return %c0_i32, %c0_i32_0 : i32, i32
  }
  func.func @transform_8(%arg0: i32) -> (i32, i32) {
    %c0_i32 = arith.constant 0 : i32
    %c0_i32_0 = arith.constant 0 : i32
    %c0_i32_1 = arith.constant 0 : i32
    return %c0_i32, %c0_i32_0 : i32, i32
  }
  func.func @transform_9(%arg0: i32) -> (i32, i32) {
    %c0_i32 = arith.constant 0 : i32
    %c0_i32_0 = arith.constant 0 : i32
    %c0_i32_1 = arith.constant 0 : i32
    return %c0_i32, %c0_i32_0 : i32, i32
  }
  func.func @transform_10(%arg0: i32) -> (i32, i32) {
    %c0_i32 = arith.constant 0 : i32
    %c0_i32_0 = arith.constant 0 : i32
    %c0_i32_1 = arith.constant 0 : i32
    return %c0_i32, %c0_i32_0 : i32, i32
  }
  func.func @transform_11(%arg0: i32) -> (i32, i32) {
    %c0_i32 = arith.constant 0 : i32
    %c0_i32_0 = arith.constant 0 : i32
    return %arg0, %c0_i32 : i32, i32
  }
}

</mosaic_0001>

<bundles_post_ra>
// kernel: qnetwork_forward.1
= control target key start
LH: loop header
LB: loop body
LE: loop exit
PB: predicated region body
PF: predicated region fallthrough
CT: control target
= control target key end

     0   :  { %vm51_vm0 = vcmask 1043456   ;;  %vm47_vm1 = vcmask 31744   ;;  %v871_v0 = vmov 0.0   ;;  %vm872_vm2 = vmmov 0   ;;  %s1193_s1 = inlined_call_operand.vmem [shape: f32[4,128], index: 1, kind: input, shape index: {}]   ;;  %s1194_s0 = inlined_call_operand.vmem [shape: f32[8,4], index: 0, kind: input, shape index: {}]   ;;  %s1195_s3 = inlined_call_operand.vmem [shape: f32[128,128], index: 3, kind: input, shape index: {}]   ;;  %s1196_s2 = inlined_call_operand.vmem [shape: f32[1,128], index: 2, kind: input, shape index: {}]   ;;  %s1197_s5 = inlined_call_operand.vmem [shape: f32[128,128], index: 5, kind: input, shape index: {}]   ;;  %s1198_s4 = inlined_call_operand.vmem [shape: f32[1,128], index: 4, kind: input, shape index: {}]   ;;  %s1199_s7 = inlined_call_operand.vmem [shape: f32[128,128], index: 7, kind: input, shape index: {}]   ;;  %s1200_s6 = inlined_call_operand.vmem [shape: f32[1,128], index: 6, kind: input, shape index: {}]   ;;  %s1201_s9 = inlined_call_operand.vmem [shape: f32[128,128], index: 9, kind: input, shape index: {}]   ;;  %s1202_s8 = inlined_call_operand.vmem [shape: f32[1,128], index: 8, kind: input, shape index: {}]   ;;  %s1203_s10 = inlined_call_operand.vmem [shape: f32[1,128], index: 10, kind: input, shape index: {}]   ;;  %s1204_s11 = inlined_call_operand.vmem [shape: f32[8,128], index: 11, kind: output, shape index: {}]  }
   0x1   :  { %611 = vmatprep.subr.mxu0 %v871_v0  ;;  %v39_v1 = vld [vmem:[%s1193_s1] sm:$0xf]  ;;  %613 = vmatprep.mubr.msk.f32.mxu0 %vm872_vm2, %v871_v0  ;;  %v873_v3 = vmov 0.0|0.0   ;;  %v133_v5 = vld [vmem:[%s1195_s3 + $0x8] sm:$0xff]  ;;  %v134_v7 = vld [vmem:[%s1195_s3 + $0x10] sm:$0xff] }
   0x2   :  { %v38_v2 = vld [vmem:[%s1194_s0] sm:$0xff]  ;;  %612 = vmatpush3.msk.msra.mxu0 %vm51_vm0, %v39_v1  ;;  %756 = vmatprep.subr.bf16.mxu1 %v873_v3  ;;  %v135_v8 = vld [vmem:[%s1195_s3 + $0x18] sm:$0xff]  ;;  %v137_v11 = vld [vmem:[%s1195_s3 + $0x28] sm:$0xff] }
   0x3   :  { %614 = vmatmul.mubr.msk.f32.vlgmr.msra.gmra.mrb[0].mxu0 %vm47_vm1, %v38_v2  ;;  %648 = vmatprep.mubr.msk.f32.mxu1 %vm872_vm2, %v871_v0  ;;  %v132_v4 = vld [vmem:[%s1195_s3] sm:$0xff]  ;;  %v760_v9 = vpack.c.bf16 %v135_v8, %v134_v7  ;;  %v138_v13 = vld [vmem:[%s1195_s3 + $0x30] sm:$0xff]  ;;  %v139_v14 = vld [vmem:[%s1195_s3 + $0x38] sm:$0xff] }
   0x4   :  { %780 = vmatprep.subr.bf16.mxu0 %v873_v3  ;;  %683 = vmatprep.mubr.msk.f32.mxu0 %vm872_vm2, %v871_v0  ;;  %v757_v6 = vpack.c.bf16 %v133_v5, %v132_v4  ;;  %v136_v10 = vld [vmem:[%s1195_s3 + $0x20] sm:$0xff]  ;;  %v766_v15 = vpack.c.bf16 %v139_v14, %v138_v13  ;;  %v141_v17 = vld [vmem:[%s1195_s3 + $0x48] sm:$0xff]  ;;  %v142_v19 = vld [vmem:[%s1195_s3 + $0x50] sm:$0xff] }
   0x5   :  { %v763_v12 = vpack.c.bf16 %v137_v11, %v136_v10  ;;  %v140_v16 = vld [vmem:[%s1195_s3 + $0x40] sm:$0xff]  ;;  %v143_v20 = vld [vmem:[%s1195_s3 + $0x58] sm:$0xff]  ;;  %v145_v23 = vld [vmem:[%s1195_s3 + $0x68] sm:$0xff] }
   0x6   :  { %758 = vmatpush3.bf16.msra.mxu1 %v757_v6  ;;  %v769_v18 = vpack.c.bf16 %v141_v17, %v140_v16  ;;  %v772_v21 = vpack.c.bf16 %v143_v20, %v142_v19  ;;  %v144_v22 = vld [vmem:[%s1195_s3 + $0x60] sm:$0xff]  ;;  %v146_v25 = vld [vmem:[%s1195_s3 + $0x70] sm:$0xff]  ;;  %v147_v26 = vld [vmem:[%s1195_s3 + $0x78] sm:$0xff] }
   0x7   :  { %759 = vmatprep.subr.bf16.mxu1 %v873_v3  ;;  %v775_v24 = vpack.c.bf16 %v145_v23, %v144_v22  ;;  %v778_v27 = vpack.c.bf16 %v147_v26, %v146_v25  ;;  %v530_v28 = vld [vmem:[%s1196_s2] ss:$0 sm:$0xff]  ;;  %v233_v38 = vld [vmem:[%s1197_s5 + $0x8] sm:$0xff]  ;;  %v234_v40 = vld [vmem:[%s1197_s5 + $0x10] sm:$0xff] }
   0x8   :  { %v232_v37 = vld [vmem:[%s1197_s5] sm:$0xff]  ;;  %v235_v41 = vld [vmem:[%s1197_s5 + $0x18] sm:$0xff]  ;;  %v237_v44 = vld [vmem:[%s1197_s5 + $0x28] sm:$0xff] }
   0x9   :  { %v781_v39 = vpack.c.bf16 %v233_v38, %v232_v37  ;;  %v784_v42 = vpack.c.bf16 %v235_v41, %v234_v40  ;;  %v236_v43 = vld [vmem:[%s1197_s5 + $0x20] sm:$0xff]  ;;  %v238_v46 = vld [vmem:[%s1197_s5 + $0x30] sm:$0xff]  ;;  %v239_v47 = vld [vmem:[%s1197_s5 + $0x38] sm:$0xff] }
   0xa   :  { %761 = vmatpush3.bf16.msra.mxu1 %v760_v9  ;;  %v787_v45 = vpack.c.bf16 %v237_v44, %v236_v43  ;;  %v790_v48 = vpack.c.bf16 %v239_v47, %v238_v46  ;;  %v240_v49 = vld [vmem:[%s1197_s5 + $0x40] sm:$0xff]  ;;  %v241_v50 = vld [vmem:[%s1197_s5 + $0x48] sm:$0xff]  ;;  %v242_v52 = vld [vmem:[%s1197_s5 + $0x50] sm:$0xff] }
   0xb   :  { %762 = vmatprep.subr.bf16.mxu1 %v873_v3  ;;  %782 = vmatpush3.bf16.msra.mxu0 %v781_v39  ;;  %v793_v51 = vpack.c.bf16 %v241_v50, %v240_v49  ;;  %v243_v53 = vld [vmem:[%s1197_s5 + $0x58] sm:$0xff]  ;;  %v244_v55 = vld [vmem:[%s1197_s5 + $0x60] sm:$0xff]  ;;  %v245_v56 = vld [vmem:[%s1197_s5 + $0x68] sm:$0xff] }
   0xc   :  { %783 = vmatprep.subr.bf16.mxu0 %v873_v3  ;;  %v796_v54 = vpack.c.bf16 %v243_v53, %v242_v52  ;;  %v799_v57 = vpack.c.bf16 %v245_v56, %v244_v55  ;;  %v246_v58 = vld [vmem:[%s1197_s5 + $0x70] sm:$0xff]  ;;  %v247_v59 = vld [vmem:[%s1197_s5 + $0x78] sm:$0xff]  ;;  %v534_v61 = vld [vmem:[%s1198_s4] ss:$0 sm:$0xff] }
   0xd   :  { %v802_v60 = vpack.c.bf16 %v247_v59, %v246_v58  ;;  %v332_v8 = vld [vmem:[%s1199_s7] sm:$0xff]  ;;  %v333_v9 = vld [vmem:[%s1199_s7 + $0x8] sm:$0xff]  ;;  %v334_v11 = vld [vmem:[%s1199_s7 + $0x10] sm:$0xff] }
   0xe   :  { %764 = vmatpush3.bf16.msra.mxu1 %v763_v12  ;;  %v805_v10 = vpack.c.bf16 %v333_v9, %v332_v8  ;;  %v336_v13 = vld [vmem:[%s1199_s7 + $0x20] sm:$0xff]  ;;  %v337_v14 = vld [vmem:[%s1199_s7 + $0x28] sm:$0xff]  ;;  %v338_v16 = vld [vmem:[%s1199_s7 + $0x30] sm:$0xff] }
   0xf   :  { %765 = vmatprep.subr.bf16.mxu1 %v873_v3  ;;  %785 = vmatpush3.bf16.msra.mxu0 %v784_v42  ;;  %v339_v17 = vld [vmem:[%s1199_s7 + $0x38] sm:$0xff]  ;;  %v340_v19 = vld [vmem:[%s1199_s7 + $0x40] sm:$0xff]  ;;  %v341_v20 = vld [vmem:[%s1199_s7 + $0x48] sm:$0xff] }
  0x10   :  { %786 = vmatprep.subr.bf16.mxu0 %v873_v3  ;;  %v342_v22 = vld [vmem:[%s1199_s7 + $0x50] sm:$0xff]  ;;  %v343_v23 = vld [vmem:[%s1199_s7 + $0x58] sm:$0xff]  ;;  %v344_v25 = vld [vmem:[%s1199_s7 + $0x60] sm:$0xff] }
  0x11   :  { %v345_v26 = vld [vmem:[%s1199_s7 + $0x68] sm:$0xff]  ;;  %v432_v40 = vld [vmem:[%s1201_s9] sm:$0xff]  ;;  %v434_v43 = vld [vmem:[%s1201_s9 + $0x10] sm:$0xff] }
  0x12   :  { %767 = vmatpush3.bf16.msra.mxu1 %v766_v15  ;;  %v811_v15 = vpack.c.bf16 %v337_v14, %v336_v13  ;;  %v433_v41 = vld [vmem:[%s1201_s9 + $0x8] sm:$0xff]  ;;  %v435_v44 = vld [vmem:[%s1201_s9 + $0x18] sm:$0xff]  ;;  %v436_v46 = vld [vmem:[%s1201_s9 + $0x20] sm:$0xff] }
  0x13   :  { %768 = vmatprep.subr.bf16.mxu1 %v873_v3  ;;  %788 = vmatpush3.bf16.msra.mxu0 %v787_v45  ;;  %v829_v42 = vpack.c.bf16 %v433_v41, %v432_v40  ;;  %v832_v45 = vpack.c.bf16 %v435_v44, %v434_v43  ;;  %v437_v47 = vld [vmem:[%s1201_s9 + $0x28] sm:$0xff]  ;;  %v438_v49 = vld [vmem:[%s1201_s9 + $0x30] sm:$0xff]  ;;  %v439_v50 = vld [vmem:[%s1201_s9 + $0x38] sm:$0xff] }
  0x14   :  { %789 = vmatprep.subr.bf16.mxu0 %v873_v3  ;;  %v440_v52 = vld [vmem:[%s1201_s9 + $0x40] sm:$0xff]  ;;  %v441_v53 = vld [vmem:[%s1201_s9 + $0x48] sm:$0xff]  ;;  %v442_v55 = vld [vmem:[%s1201_s9 + $0x50] sm:$0xff] }
  0x15   :  { %v443_v56 = vld [vmem:[%s1201_s9 + $0x58] sm:$0xff]  ;;  %v444_v58 = vld [vmem:[%s1201_s9 + $0x60] sm:$0xff]  ;;  %v445_v59 = vld [vmem:[%s1201_s9 + $0x68] sm:$0xff] }
  0x16   :  { %770 = vmatpush3.bf16.msra.mxu1 %v769_v18  ;;  %v814_v18 = vpack.c.bf16 %v339_v17, %v338_v16 }
  0x17   :  { %771 = vmatprep.subr.bf16.mxu1 %v873_v3  ;;  %791 = vmatpush3.bf16.msra.mxu0 %v790_v48  ;;  %v835_v48 = vpack.c.bf16 %v437_v47, %v436_v46 }
  0x18   :  { %792 = vmatprep.subr.bf16.mxu0 %v873_v3 }
  0x1a   :  { %773 = vmatpush3.bf16.msra.mxu1 %v772_v21  ;;  %v817_v21 = vpack.c.bf16 %v341_v20, %v340_v19 }
  0x1b   :  { %774 = vmatprep.subr.bf16.mxu1 %v873_v3  ;;  %794 = vmatpush3.bf16.msra.mxu0 %v793_v51  ;;  %v838_v51 = vpack.c.bf16 %v439_v50, %v438_v49 }
  0x1c   :  { %795 = vmatprep.subr.bf16.mxu0 %v873_v3 }
  0x1e   :  { %776 = vmatpush3.bf16.msra.mxu1 %v775_v24  ;;  %v820_v24 = vpack.c.bf16 %v343_v23, %v342_v22 }
  0x1f   :  { %777 = vmatprep.subr.bf16.mxu1 %v873_v3  ;;  %797 = vmatpush3.bf16.msra.mxu0 %v796_v54  ;;  %v841_v54 = vpack.c.bf16 %v441_v53, %v440_v52 }
  0x20   :  { %798 = vmatprep.subr.bf16.mxu0 %v873_v3 }
  0x22   :  { %779 = vmatpush3.bf16.msra.mxu1 %v778_v27  ;;  %v823_v27 = vpack.c.bf16 %v345_v26, %v344_v25 }
  0x23   :  { %804 = vmatprep.subr.bf16.mxu1 %v873_v3  ;;  %800 = vmatpush3.bf16.msra.mxu0 %v799_v57  ;;  %v844_v57 = vpack.c.bf16 %v443_v56, %v442_v55 }
  0x24   :  { %801 = vmatprep.subr.bf16.mxu0 %v873_v3 }
  0x27   :  { %803 = vmatpush3.bf16.msra.mxu0 %v802_v60  ;;  %v847_v60 = vpack.c.bf16 %v445_v59, %v444_v58 }
  0x28   :  { %828 = vmatprep.subr.bf16.mxu0 %v873_v3 }
  0xd6   :  { %v121_v29 = vpop.f32.mrb[0].mxu0 }
  0xd7   :  { %v122_v30 = vadd.f32 %v530_v28, %v121_v29  ;;  %v615_v31 = vpop.f32.mrb[1].mxu0  ;;  %v346_v28 = vld [vmem:[%s1199_s7 + $0x70] sm:$0xff]  ;;  %v347_v29 = vld [vmem:[%s1199_s7 + $0x78] sm:$0xff] }
  0xd8   :  { %v536_v31 = vld [vmem:[%s1200_s6] ss:$0 sm:$0xff] }
  0xd9   :  { %v533_v32 = vmul.f32 -1.442695, %v122_v30 }
  0xdb   :  { %855 = vpow2.f32 %v533_v32 }
  0xe5   :  { %v856_v33 = vpop.eup %855 }
  0xe6   :  { %v128_v34 = vadd.f32 1.0, %v856_v33 }
  0xe8   :  { %857 = vrcp.f32 %v128_v34 }
  0xf2   :  { %v858_v35 = vpop.eup %857 }
  0xf3   :  { %v131_v36 = vmul.f32 %v858_v35, %v122_v30  ;;  %v826_v30 = vpack.c.bf16 %v347_v29, %v346_v28 }
  0xf5   :  { %649 = vmatmul.mubr.f32.vlgmr.msra.gmra.mrb[0].mxu1 %v131_v36 }
  0xf6   :  { %718 = vmatprep.mubr.msk.f32.mxu1 %vm872_vm2, %v871_v0  ;;  %806 = vmatpush3.bf16.msra.mxu1 %v805_v10  ;;  %v540_v10 = vld [vmem:[%s1203_s10] ss:$0 sm:$0xff] }
  0xf7   :  { %807 = vmatprep.subr.bf16.mxu1 %v873_v3 }
 0x1c8   :  { %v221_v62 = vpop.f32.mrb[0].mxu1 }
 0x1c9   :  { %v222_v63 = vadd.f32 %v534_v61, %v221_v62  ;;  %v650_v1 = vpop.f32.mrb[1].mxu1  ;;  %v446_v61 = vld [vmem:[%s1201_s9 + $0x70] sm:$0xff]  ;;  %v447_v62 = vld [vmem:[%s1201_s9 + $0x78] sm:$0xff] }
 0x1ca   :  { %v538_v1 = vld [vmem:[%s1202_s8] ss:$0 sm:$0xff] }
 0x1cb   :  { %v535_v2 = vmul.f32 -1.442695, %v222_v63 }
 0x1cd   :  { %859 = vpow2.f32 %v535_v2 }
 0x1d7   :  { %v860_v4 = vpop.eup %859 }
 0x1d8   :  { %v228_v5 = vadd.f32 1.0, %v860_v4 }
 0x1da   :  { %861 = vrcp.f32 %v228_v5 }
 0x1e4   :  { %v862_v6 = vpop.eup %861 }
 0x1e5   :  { %v231_v7 = vmul.f32 %v862_v6, %v222_v63  ;;  %v850_v63 = vpack.c.bf16 %v447_v62, %v446_v61 }
 0x1e7   :  { %684 = vmatmul.mubr.f32.vlgmr.msra.gmra.mrb[2].mxu0 %v231_v7 }
 0x1e8   :  { %753 = vmatprep.mubr.msk.f32.mxu0 %vm872_vm2, %v871_v0  ;;  %v335_v0 = vld [vmem:[%s1199_s7 + $0x18] sm:$0xff]  ;;  %830 = vmatpush3.bf16.msra.mxu0 %v829_v42 }
 0x1e9   :  { %v808_v12 = vpack.c.bf16 %v335_v0, %v334_v11  ;;  %831 = vmatprep.subr.bf16.mxu0 %v873_v3 }
 0x1eb   :  { %809 = vmatpush3.bf16.msra.mxu1 %v808_v12 }
 0x1ec   :  { %810 = vmatprep.subr.bf16.mxu1 %v873_v3  ;;  %833 = vmatpush3.bf16.msra.mxu0 %v832_v45 }
 0x1ed   :  { %834 = vmatprep.subr.bf16.mxu0 %v873_v3 }
 0x1ef   :  { %812 = vmatpush3.bf16.msra.mxu1 %v811_v15 }
 0x1f0   :  { %813 = vmatprep.subr.bf16.mxu1 %v873_v3  ;;  %836 = vmatpush3.bf16.msra.mxu0 %v835_v48 }
 0x1f1   :  { %837 = vmatprep.subr.bf16.mxu0 %v873_v3 }
 0x1f3   :  { %815 = vmatpush3.bf16.msra.mxu1 %v814_v18 }
 0x1f4   :  { %816 = vmatprep.subr.bf16.mxu1 %v873_v3  ;;  %839 = vmatpush3.bf16.msra.mxu0 %v838_v51 }
 0x1f5   :  { %840 = vmatprep.subr.bf16.mxu0 %v873_v3 }
 0x1f7   :  { %818 = vmatpush3.bf16.msra.mxu1 %v817_v21 }
 0x1f8   :  { %819 = vmatprep.subr.bf16.mxu1 %v873_v3  ;;  %842 = vmatpush3.bf16.msra.mxu0 %v841_v54 }
 0x1f9   :  { %843 = vmatprep.subr.bf16.mxu0 %v873_v3 }
 0x1fb   :  { %821 = vmatpush3.bf16.msra.mxu1 %v820_v24 }
 0x1fc   :  { %822 = vmatprep.subr.bf16.mxu1 %v873_v3  ;;  %845 = vmatpush3.bf16.msra.mxu0 %v844_v57 }
 0x1fd   :  { %846 = vmatprep.subr.bf16.mxu0 %v873_v3 }
 0x1ff   :  { %824 = vmatpush3.bf16.msra.mxu1 %v823_v27 }
 0x200   :  { %825 = vmatprep.subr.bf16.mxu1 %v873_v3  ;;  %848 = vmatpush3.bf16.msra.mxu0 %v847_v60 }
 0x201   :  { %849 = vmatprep.subr.bf16.mxu0 %v873_v3 }
 0x203   :  { %827 = vmatpush3.bf16.msra.mxu1 %v826_v30 }
 0x204   :  { %851 = vmatpush3.bf16.msra.mxu0 %v850_v63 }
 0x2ba   :  { %v321_v32 = vpop.f32.mrb[2].mxu0 }
 0x2bb   :  { %v322_v33 = vadd.f32 %v536_v31, %v321_v32  ;;  %v685_v34 = vpop.f32.mrb[3].mxu0 }
 0x2bd   :  { %v537_v35 = vmul.f32 -1.442695, %v322_v33 }
 0x2bf   :  { %863 = vpow2.f32 %v537_v35 }
 0x2c9   :  { %v864_v36 = vpop.eup %863 }
 0x2ca   :  { %v328_v37 = vadd.f32 1.0, %v864_v36 }
 0x2cc   :  { %865 = vrcp.f32 %v328_v37 }
 0x2d6   :  { %v866_v38 = vpop.eup %865 }
 0x2d7   :  { %v331_v39 = vmul.f32 %v866_v38, %v322_v33 }
 0x2d9   :  { %719 = vmatmul.mubr.f32.vlgmr.msra.gmra.mrb[2].mxu1 %v331_v39 }
 0x3ac   :  { %v421_v2 = vpop.f32.mrb[2].mxu1 }
 0x3ad   :  { %v422_v4 = vadd.f32 %v538_v1, %v421_v2  ;;  %v720_v5 = vpop.f32.mrb[3].mxu1 }
 0x3af   :  { %v539_v6 = vmul.f32 -1.442695, %v422_v4 }
 0x3b1   :  { %867 = vpow2.f32 %v539_v6 }
 0x3bb   :  { %v868_v3 = vpop.eup %867 }
 0x3bc   :  { %v428_v7 = vadd.f32 1.0, %v868_v3 }
 0x3be   :  { %869 = vrcp.f32 %v428_v7 }
 0x3c8   :  { %v870_v8 = vpop.eup %869 }
 0x3c9   :  { %v431_v9 = vmul.f32 %v870_v8, %v422_v4 }
 0x3cb   :  { %754 = vmatmul.mubr.f32.vlgmr.msra.gmra.mrb[4].mxu0 %v431_v9 }
 0x49e   :  { %v521_v11 = vpop.f32.mrb[4].mxu0 }
 0x49f   :  { %v522_v0 = vadd.f32 %v540_v10, %v521_v11  ;;  %v755_v12 = vpop.f32.mrb[5].mxu0 }
 0x4a1   :  { %525 = vst [vmem:[%s1204_s11] sm:$0xff] %v522_v0 }

</bundles_post_ra>
